<compile_context>
chip_gen: v7x
topology: tpu7x:2x2x1
jax: 0.10.0
libtpu: 0.0.40
codegen_flags: <defaults>
</compile_context>

<pallas_src>
import jax
import jax.numpy as jnp
from jax.experimental import pallas as pl
from jax.experimental.pallas import tpu as pltpu

# Only split a single-step grid for megacore balance if each step still moves
# enough data to hide the ~0.35us per-step overhead.
_MIN_PARALLEL_STEP_BYTES = 2 * 1024 * 1024


def _tpu_vmem_capacity_bytes():
    """Per-core VMEM capacity; conservative fallback = v7x (64 MiB)."""
    try:
        cap = int(pltpu.get_tpu_info().vmem_capacity_bytes)
        if cap >= (32 << 20):
            return cap
    except Exception:
        pass
    return 64 * 1024 * 1024


def _num_tensorcores():
    """2 TensorCores only on v7x-class chips; v5e/v6e have 1."""
    try:
        kind = jax.devices()[0].device_kind.lower()
        if "v7" in kind or "7x" in kind:
            return 2
    except Exception:
        pass
    return 1


def _pick_batch_tile(batch, max_bt, bytes_per_sample, num_cores):
    """Largest batch tile that fits the VMEM budget (no exact-divisor
    requirement; Pallas masks the ragged last block).  Only split a
    single-step grid when the chip has 2 TensorCores and each step still
    moves enough data to amortize the per-step overhead."""
    if max_bt < 1:
        return None
    bt = min(batch, max_bt)
    steps = -(-batch // bt)
    if num_cores >= 2 and steps < 2 and batch >= 2:
        half = -(-batch // 2)
        if half * bytes_per_sample >= _MIN_PARALLEL_STEP_BYTES:
            bt = min(half, max_bt)
    return bt


def _se_fused_kernel(x_ref, w1t_ref, w2t_ref, o_ref):
    # x_ref  : (Bt, C, HW)
    # w1t_ref: (C, Cr)   (= conv1 weight transposed)
    # w2t_ref: (Cr, C)   (= conv2 weight transposed)
    C, Cr = w1t_ref.shape
    # f32 *accumulator* pooling -- does NOT materialize an f32 copy of the slab.
    mean = jnp.mean(x_ref[...], axis=-1, dtype=jnp.float32)           # (Bt, C)
    w1t = w1t_ref[...].astype(jnp.float32)
    w2t = w2t_ref[...].astype(jnp.float32)
    if Cr < 16 and C <= 1024:
        # Tiny excitation FCs -> VPU broadcast-mul-sum (avoids masked MXU
        # pops and extra lane->sublane relayouts for sub-128 dims).
        h = jnp.sum(mean[:, :, None] * w1t[None, :, :], axis=1)       # (Bt, Cr)
        h = jnp.maximum(h, 0.0)
        s = jnp.sum(h[:, :, None] * w2t[None, :, :], axis=1)          # (Bt, C)
    else:
        h = jnp.maximum(
            jnp.dot(mean, w1t, preferred_element_type=jnp.float32), 0.0)
        s = jnp.dot(h, w2t, preferred_element_type=jnp.float32)
    s = jax.nn.sigmoid(s)                                             # EUP, ~free
    # Rescale in x's native dtype: bf16 stays bf16 on v6e/v7x (halves VALU +
    # store traffic); f32 inputs keep exact f32 math (matches reference).
    o_ref[...] = (x_ref[...] * s.astype(x_ref.dtype)[:, :, None]).astype(o_ref.dtype)


def _se_rescale_kernel(x_ref, s_ref, o_ref):
    # x_ref: (1, C, ht)   s_ref: (1, 1, C)  (lane-dense scale block)
    s = jnp.swapaxes(s_ref[...], -1, -2)            # (1, C, 1), tiny relayout
    o_ref[...] = (x_ref[...] * s.astype(x_ref.dtype)).astype(o_ref.dtype)


def se_layer_2d(x_nchw, w1, w2, *, donate_x=False):
    """SE forward.  x_nchw: (B, C, H, W); w1: (C//r, C); w2: (C, C//r).
    Set donate_x=True only when the caller no longer needs x (aliases the
    input HBM buffer to the output)."""
    B, C, H, W = x_nchw.shape
    HW = H * W
    Cr = w1.shape[0]
    x_flat = x_nchw.reshape(B, C, HW)
    itemsize = jnp.dtype(x_nchw.dtype).itemsize

    cap = _tpu_vmem_capacity_bytes()
    if cap <= (64 << 20):
        tile_budget = cap // 2            # v7x-class: leave real headroom
    else:
        tile_budget = (cap * 5) // 8      # 128 MiB parts (v5e/v6e)
    vmem_limit = int(min(cap * 7 // 8, tile_budget + (16 << 20)))

    bytes_per_sample = C * HW * itemsize
    # Working set per resident sample: double-buffered in + out slabs plus
    # small f32 per-row intermediates (mean / h / s) -- no f32 slab anymore.
    per_sample = 4 * bytes_per_sample + 16 * C * 4
    max_bt = tile_budget // per_sample
    bt = _pick_batch_tile(B, max_bt, bytes_per_sample, _num_tensorcores())

    io_alias = {0: 0} if donate_x else {}

    if bt is not None:
        # ---- single-pass fused kernel: one (bt, C, HW) slab per grid step ----
        cost = pl.CostEstimate(
            flops=int(2 * B * C * HW + 4 * B * C * Cr),
            transcendentals=int(B * C),
            bytes_accessed=int(2 * B * C * HW * itemsize + 2 * C * Cr * 4),
        )
        out_flat = pl.pallas_call(
            _se_fused_kernel,
            out_shape=jax.ShapeDtypeStruct((B, C, HW), x_nchw.dtype),
            grid_spec=pltpu.PrefetchScalarGridSpec(
                num_scalar_prefetch=0,
                grid=(pl.cdiv(B, bt),),               # ragged last block OK
                in_specs=[
                    pl.BlockSpec((bt, C, HW), lambda b: (b, 0, 0)),
                    pl.BlockSpec((C, Cr), lambda b: (0, 0)),
                    pl.BlockSpec((Cr, C), lambda b: (0, 0)),
                ],
                out_specs=pl.BlockSpec((bt, C, HW), lambda b: (b, 0, 0)),
            ),
            compiler_params=pltpu.CompilerParams(
                dimension_semantics=("parallel",),
                vmem_limit_bytes=vmem_limit,
            ),
            cost_estimate=cost,
            input_output_aliases=io_alias,
        )(x_flat, w1.T, w2.T)
        return out_flat.reshape(B, C, H, W)

    # ---- fallback: a single (C, HW) plane exceeds the VMEM budget ----------
    # Pass 1 (negligible FLOPs, one HBM read): pooled means + scales in JAX.
    # Pass 2: lane-dense, purely elementwise Pallas rescale.
    # The second HBM read of x is inherent once a sample no longer fits VMEM.
    mean = jnp.mean(x_flat, axis=-1, dtype=jnp.float32)                  # (B, C)
    h = jnp.maximum(jnp.einsum('rc,bc->br', w1.astype(jnp.float32), mean), 0.0)
    scale = jax.nn.sigmoid(jnp.einsum('cr,br->bc', w2.astype(jnp.float32), h))
    scale = scale.reshape(B, 1, C)                 # lane-dense per-sample scale

    # HW tile: multiple of 128 (or the full HW), sized against the budget.
    ht_budget = tile_budget // max(4 * C * itemsize, 1)
    ht = min(HW, 8192, max((ht_budget // 128) * 128, 128))
    if ht >= HW:
        ht = HW
    cost = pl.CostEstimate(
        flops=int(B * C * HW),
        transcendentals=0,
        bytes_accessed=int(2 * B * C * HW * itemsize + B * C * 4),
    )
    out_flat = pl.pallas_call(
        _se_rescale_kernel,
        out_shape=jax.ShapeDtypeStruct((B, C, HW), x_nchw.dtype),
        grid_spec=pltpu.PrefetchScalarGridSpec(
            num_scalar_prefetch=0,
            grid=(B, pl.cdiv(HW, ht)),
            in_specs=[
                pl.BlockSpec((1, C, ht), lambda b, hi: (b, 0, hi)),
                pl.BlockSpec((1, 1, C), lambda b, hi: (b, 0, 0)),
            ],
            out_specs=pl.BlockSpec((1, C, ht), lambda b, hi: (b, 0, hi)),
        ),
        compiler_params=pltpu.CompilerParams(
            dimension_semantics=("parallel", "parallel"),
            vmem_limit_bytes=vmem_limit,
        ),
        cost_estimate=cost,
        input_output_aliases=io_alias,
    )(x_flat, scale)
    return out_flat.reshape(B, C, H, W)


def _reference(x, w1, w2):
    # pure-JAX reference of the PyTorch forward
    y = jnp.mean(x, axis=(2, 3))                              # (B, C)
    h = jnp.maximum(jnp.einsum('rc,bc->br', w1, y), 0.0)      # (B, Cr)
    s = jax.nn.sigmoid(jnp.einsum('cr,br->bc', w2, h))        # (B, C)
    return x * s[:, :, None, None]


if __name__ == "__main__":
    # small shapes consistent with the module: channel=32, reduction=16
    B, C, H, W = 2, 32, 16, 16
    reduction = 16
    Cr = C // reduction

    key = jax.random.PRNGKey(0)
    kx, k1, k2 = jax.random.split(key, 3)
    x = jax.random.normal(kx, (B, C, H, W), dtype=jnp.float32)
    # Conv2d 1x1 with bias=False -> plain matrices
    w1 = jax.random.normal(k1, (Cr, C), dtype=jnp.float32) * (1.0 / C ** 0.5)
    w2 = jax.random.normal(k2, (C, Cr), dtype=jnp.float32) * (1.0 / Cr ** 0.5)

    out = se_layer_2d(x, w1, w2)
    out = jax.block_until_ready(out)

    ref = _reference(x, w1, w2)
    assert out.shape == (B, C, H, W)
    assert jnp.allclose(out, ref, atol=1e-5, rtol=1e-5), "mismatch vs reference"

    print("KERNEL_OK")
</pallas_src>

<mosaic_0001>
module attributes {stable_mosaic.version = 11 : i64} {
  func.func @_se_fused_kernel(%arg0: i32, %arg1: memref<2x32x256xf32, #tpu.memory_space<vmem>>, %arg2: memref<32x2xf32, #tpu.memory_space<vmem>>, %arg3: memref<2x32xf32, #tpu.memory_space<vmem>>, %arg4: memref<2x32x256xf32, #tpu.memory_space<vmem>>) attributes {dimension_semantics = [#tpu.dimension_semantics<parallel>], iteration_bounds = array<i64: 1>, scalar_prefetch = 0 : i64, scratch_operands = 0 : i64, tpu.core_type = #tpu.core_type<tc>, window_params = [{transform_indices = @transform_0, window_bounds = array<i64: 2, 32, 256>}, {pipeline_mode = #tpu.pipeline_mode<synchronous>, transform_indices = @transform_1, window_bounds = array<i64: 32, 2>}, {pipeline_mode = #tpu.pipeline_mode<synchronous>, transform_indices = @transform_2, window_bounds = array<i64: 2, 32>}, {transform_indices = @transform_3, window_bounds = array<i64: 2, 32, 256>}]} {
    %c0 = arith.constant 0 : index
    %c0_0 = arith.constant 0 : index
    %c0_1 = arith.constant 0 : index
    %0 = vector.load %arg1[%c0, %c0_0, %c0_1] : memref<2x32x256xf32, #tpu.memory_space<vmem>>, vector<2x32x256xf32>
    %cst = arith.constant dense<0.000000e+00> : vector<2x32xf32>
    %1 = vector.multi_reduction <add>, %0, %cst [2] : vector<2x32x256xf32> to vector<2x32xf32>
    %cst_2 = arith.constant 2.560000e+02 : f32
    %2 = vector.broadcast %cst_2 : f32 to vector<2x32xf32>
    %3 = arith.divf %1, %2 : vector<2x32xf32>
    %c0_3 = arith.constant 0 : index
    %c0_4 = arith.constant 0 : index
    %4 = vector.load %arg2[%c0_3, %c0_4] : memref<32x2xf32, #tpu.memory_space<vmem>>, vector<32x2xf32>
    %c0_5 = arith.constant 0 : index
    %c0_6 = arith.constant 0 : index
    %5 = vector.load %arg3[%c0_5, %c0_6] : memref<2x32xf32, #tpu.memory_space<vmem>>, vector<2x32xf32>
    %6 = vector.shape_cast %3 : vector<2x32xf32> to vector<2x32x1xf32>
    %7 = vector.shape_cast %4 : vector<32x2xf32> to vector<1x32x2xf32>
    %8 = vector.broadcast %6 : vector<2x32x1xf32> to vector<2x32x2xf32>
    %9 = vector.broadcast %7 : vector<1x32x2xf32> to vector<2x32x2xf32>
    %10 = arith.mulf %8, %9 : vector<2x32x2xf32>
    %cst_7 = arith.constant dense<0.000000e+00> : vector<2x2xf32>
    %11 = vector.multi_reduction <add>, %10, %cst_7 [1] : vector<2x32x2xf32> to vector<2x2xf32>
    %cst_8 = arith.constant 0.000000e+00 : f32
    %12 = vector.broadcast %cst_8 : f32 to vector<2x2xf32>
    %13 = arith.maximumf %11, %12 : vector<2x2xf32>
    %14 = vector.shape_cast %13 : vector<2x2xf32> to vector<2x2x1xf32>
    %15 = vector.shape_cast %5 : vector<2x32xf32> to vector<1x2x32xf32>
    %16 = vector.broadcast %14 : vector<2x2x1xf32> to vector<2x2x32xf32>
    %17 = vector.broadcast %15 : vector<1x2x32xf32> to vector<2x2x32xf32>
    %18 = arith.mulf %16, %17 : vector<2x2x32xf32>
    %cst_9 = arith.constant dense<0.000000e+00> : vector<2x32xf32>
    %19 = vector.multi_reduction <add>, %18, %cst_9 [1] : vector<2x2x32xf32> to vector<2x32xf32>
    %20 = arith.negf %19 : vector<2x32xf32>
    %21 = math.exp %20 : vector<2x32xf32>
    %cst_10 = arith.constant 1.000000e+00 : f32
    %22 = vector.broadcast %cst_10 : f32 to vector<2x32xf32>
    %23 = arith.addf %22, %21 : vector<2x32xf32>
    %24 = arith.divf %22, %23 : vector<2x32xf32>
    %c0_11 = arith.constant 0 : index
    %c0_12 = arith.constant 0 : index
    %c0_13 = arith.constant 0 : index
    %25 = vector.load %arg1[%c0_11, %c0_12, %c0_13] : memref<2x32x256xf32, #tpu.memory_space<vmem>>, vector<2x32x256xf32>
    %26 = vector.shape_cast %24 : vector<2x32xf32> to vector<2x32x1xf32>
    %27 = vector.broadcast %26 : vector<2x32x1xf32> to vector<2x32x256xf32>
    %28 = arith.mulf %25, %27 : vector<2x32x256xf32>
    %c0_14 = arith.constant 0 : index
    %c0_15 = arith.constant 0 : index
    %c0_16 = arith.constant 0 : index
    %29 = vector.load %arg4[%c0_14, %c0_15, %c0_16] : memref<2x32x256xf32, #tpu.memory_space<vmem>>, vector<2x32x256xf32>
    tpu.vector_store %arg4[%c0_14, %c0_15, %c0_16], %28 {strides = array<i32>} : memref<2x32x256xf32, #tpu.memory_space<vmem>>, vector<2x32x256xf32>,
    return
  }
  func.func @transform_0(%arg0: i32) -> (i32, i32, i32) {
    %c0_i32 = arith.constant 0 : i32
    %c0_i32_0 = arith.constant 0 : i32
    %c0_i32_1 = arith.constant 0 : i32
    return %arg0, %c0_i32, %c0_i32_0 : i32, i32, i32
  }
  func.func @transform_1(%arg0: i32) -> (i32, i32) {
    %c0_i32 = arith.constant 0 : i32
    %c0_i32_0 = arith.constant 0 : i32
    %c0_i32_1 = arith.constant 0 : i32
    return %c0_i32, %c0_i32_0 : i32, i32
  }
  func.func @transform_2(%arg0: i32) -> (i32, i32) {
    %c0_i32 = arith.constant 0 : i32
    %c0_i32_0 = arith.constant 0 : i32
    %c0_i32_1 = arith.constant 0 : i32
    return %c0_i32, %c0_i32_0 : i32, i32
  }
  func.func @transform_3(%arg0: i32) -> (i32, i32, i32) {
    %c0_i32 = arith.constant 0 : i32
    %c0_i32_0 = arith.constant 0 : i32
    %c0_i32_1 = arith.constant 0 : i32
    return %arg0, %c0_i32, %c0_i32_0 : i32, i32, i32
  }
}

</mosaic_0001>

<bundles_post_ra>
// kernel: tpu_custom_call.1
= control target key start
LH: loop header
LB: loop body
LE: loop exit
PB: predicated region body
PF: predicated region fallthrough
CT: control target
= control target key end

     0   :  { %8 = vsyncpa [#allocation3], 0  ;;  %s437_s0 = inlined_call_operand.hbm [shape: f32[2,32,256], index: 0, kind: input, shape index: {}]   ;;  %s438_s1 = inlined_call_operand.vmem [shape: f32[32,2], index: 1, kind: input, shape index: {}]   ;;  %s439_s2 = inlined_call_operand.vmem [shape: f32[2,32], index: 2, kind: input, shape index: {}]   ;;  %s440_s3 = inlined_call_operand.hbm [shape: f32[2,32,256], index: 3, kind: output, shape index: {}]  }
   0x1   :  { %9 = vsyncpa [#allocation4], 0  ;;  %s296_s12 = smov [#allocation2]   ;;  %s248_s16 = scalar_lea.hbm %s437_s0, 2048 }
   0x2   :  { %s15_s13 = sshll.u32 %s296_s12, 4  ;;  %p249_p0 = scmp.ne.s32.totalorder %s437_s0, %s248_s16  ;;  %s16_s13 = int_to_ptr.vmem [resolvable:$true] %s15_s13 }
   0x3   :  { %p252_p1 = scmp.lt.u32.totalorder %s248_s16, %s437_s0 }
   0x5   :  { %p254_p2 = pnand %p252_p1, %p249_p0 }
   0x7   :  { %257 = shalt.err (!%p254_p2)
}
   0x8   :  { %s258_s21 = scalar_lea.vmem %s16_s13, 2048  ;;  %p263_p4 = scmp.lt.s32.totalorder %s16_s13, %s16_s13 }
   0x9   :  { %p259_p3 = scmp.ne.s32.totalorder %s16_s13, %s258_s21  ;;  %p264_p5 = scmp.lt.s32.totalorder %s258_s21, %s258_s21 }
   0xb   :  { %p265_p6 = por %p264_p5, %p263_p4 }
   0xd   :  { %p266_p7 = pnand %p265_p6, %p259_p3 }
   0xf   :  { %269 = shalt.err (!%p266_p7)
}
  0x10   :  { %s297_s22 = smov 256   ;;  %s298_s23 = smov 16  }
  0x11   :  { %21 = dma.hbm_to_vmem [thread:$0]  %s437_s0, 2048, %s16_s13, [#allocation3], %s297_s22, %s297_s22, %s298_s23  }
  0x12   :  { %292 = dma.done.wait [#allocation3], 2048  }
  0x13   :  { %293 = vsyncadd [#allocation3], 4294965248  ;;  %v335_v0 = vld [vmem:[#allocation2 + $0x40] sm:$0xff]  ;;  %v337_v1 = vld [vmem:[#allocation2 + $0x48] sm:$0xff]  ;;  %vm91_vm0 = vcmask 15360   ;;  %vm128_vm1 = vcmask 254976  }
  0x14   :  { %v339_v2 = vld [vmem:[#allocation2] sm:$0xff]  ;;  %v57_v3 = vadd.f32 %v337_v1, %v335_v0  ;;  %v343_v4 = vld [vmem:[#allocation2 + $0x8] sm:$0xff]  ;;  %v345_v5 = vld [vmem:[#allocation2 + $0x50] sm:$0xff] }
  0x15   :  { %v347_v6 = vld [vmem:[#allocation2 + $0x58] sm:$0xff]  ;;  %v45_v7 = vadd.f32 %v343_v4, %v339_v2  ;;  %v351_v8 = vld [vmem:[#allocation2 + $0x10] sm:$0xff]  ;;  %v359_v12 = vld [vmem:[#allocation2 + $0x60] sm:$0xff] }
  0x16   :  { %v353_v9 = vld [vmem:[#allocation2 + $0x18] sm:$0xff]  ;;  %58 = vadd.xlane.f32.xlu1 %v57_v3  ;;  %v60_v10 = vadd.f32 %v347_v6, %v345_v5  ;;  %v361_v13 = vld [vmem:[#allocation2 + $0x68] sm:$0xff]  ;;  %v363_v14 = vld [vmem:[#allocation2 + $0x20] sm:$0xff] }
  0x17   :  { %46 = vadd.xlane.f32.xlu0 %v45_v7  ;;  %v48_v11 = vadd.f32 %v353_v9, %v351_v8  ;;  %v365_v15 = vld [vmem:[#allocation2 + $0x28] sm:$0xff]  ;;  %v63_v16 = vadd.f32 %v361_v13, %v359_v12  ;;  %v371_v18 = vld [vmem:[#allocation2 + $0x70] sm:$0xff]  ;;  %v373_v19 = vld [vmem:[#allocation2 + $0x78] sm:$0xff] }
  0x18   :  { %v51_v17 = vadd.f32 %v365_v15, %v363_v14  ;;  %v375_v20 = vld [vmem:[#allocation2 + $0x30] sm:$0xff]  ;;  %v377_v21 = vld [vmem:[#allocation2 + $0x38] sm:$0xff]  ;;  %v66_v22 = vadd.f32 %v373_v19, %v371_v18  ;;  %v78_v27 = vld [vmem:[%s438_s1] sm:$0xff] }
  0x19   :  { %v54_v23 = vadd.f32 %v377_v21, %v375_v20  ;;  %v79_v30 = vld [vmem:[%s438_s1 + $0x8] sm:$0xff]  ;;  %v80_v40 = vld [vmem:[%s438_s1 + $0x10] sm:$0xff]  ;;  %v81_v49 = vld [vmem:[%s438_s1 + $0x18] sm:$0xff] }
  0x1a   :  { %61 = vadd.xlane.f32.xlu1 %v60_v10 }
  0x1b   :  { %49 = vadd.xlane.f32.xlu0 %v48_v11 }
  0x1e   :  { %64 = vadd.xlane.f32.xlu1 %v63_v16 }
  0x1f   :  { %52 = vadd.xlane.f32.xlu0 %v51_v17 }
  0x22   :  { %67 = vadd.xlane.f32.xlu1 %v66_v22 }
  0x23   :  { %55 = vadd.xlane.f32.xlu0 %v54_v23 }
  0xa3   :  { %v59_v24 = vpop.xlane.xlu1 %58 }
  0xa4   :  { %v74_v25 = vmul.f32 0.00390625, %v59_v24  ;;  %v47_v26 = vpop.xlane.xlu0 %46 }
  0xa5   :  { %v70_v33 = vmul.f32 0.00390625, %v47_v26 }
  0xa6   :  { %v87_v28 = vmul.f32 %v78_v27, %v74_v25 }
  0xa7   :  { %v62_v29 = vpop.xlane.xlu1 %61  ;;  %v83_v43 = vmul.f32 %v78_v27, %v70_v33 }
  0xa8   :  { %v75_v31 = vmul.f32 0.00390625, %v62_v29  ;;  %v50_v32 = vpop.xlane.xlu0 %49  ;;  %v105_v35 = vsel %vm91_vm0, %v87_v28, 0.0 }
  0xa9   :  { %v71_v34 = vmul.f32 0.00390625, %v50_v32  ;;  %v92_v54 = vsel %vm91_vm0, %v83_v43, 0.0  ;;  %v82_v32 = vld [vmem:[%s439_s2] sm:$0x3]  ;;  %s299_s2 = smov [#allocation5]  }
  0xaa   :  { %v88_v36 = vmul.f32 %v79_v30, %v75_v31  ;;  %s222_s7 = sshll.u32 %s299_s2, 4  ;;  %s223_s7 = int_to_ptr.vmem [resolvable:$true] %s222_s7 }
  0xab   :  { %v84_v37 = vmul.f32 %v79_v30, %v71_v34  ;;  %v65_v38 = vpop.xlane.xlu1 %64  ;;  %s270_s8 = scalar_lea.vmem %s223_s7, 2048  ;;  %p275_p9 = scmp.lt.s32.totalorder %s223_s7, %s223_s7 }
  0xac   :  { %v106_v39 = vsel %vm91_vm0, %v88_v36, 0.0  ;;  %v76_v41 = vmul.f32 0.00390625, %v65_v38  ;;  %v53_v42 = vpop.xlane.xlu0 %52  ;;  %p271_p8 = scmp.ne.s32.totalorder %s223_s7, %s270_s8  ;;  %p276_p10 = scmp.lt.s32.totalorder %s270_s8, %s270_s8 }
  0xad   :  { %v107_v44 = vadd.f32 %v106_v39, %v105_v35  ;;  %v72_v45 = vmul.f32 0.00390625, %v53_v42  ;;  %v93_v47 = vsel %vm91_vm0, %v84_v37, 0.0 }
  0xae   :  { %v89_v46 = vmul.f32 %v80_v40, %v76_v41  ;;  %v94_v58 = vadd.f32 %v93_v47, %v92_v54  ;;  %p277_p11 = por %p276_p10, %p275_p9 }
  0xaf   :  { %v85_v48 = vmul.f32 %v80_v40, %v72_v45  ;;  %v68_v50 = vpop.xlane.xlu1 %67 }
  0xb0   :  { %v108_v51 = vsel %vm91_vm0, %v89_v46, 0.0  ;;  %v77_v52 = vmul.f32 0.00390625, %v68_v50  ;;  %v56_v53 = vpop.xlane.xlu0 %55  ;;  %p278_p12 = pnand %p277_p11, %p271_p8 }
  0xb1   :  { %v109_v55 = vadd.f32 %v108_v51, %v107_v44  ;;  %v95_v56 = vsel %vm91_vm0, %v85_v48, 0.0  ;;  %v73_v57 = vmul.f32 0.00390625, %v56_v53 }
  0xb2   :  { %v90_v59 = vmul.f32 %v81_v49, %v77_v52  ;;  %v96_v61 = vadd.f32 %v95_v56, %v94_v58 }
  0xb3   :  { %v86_v60 = vmul.f32 %v81_v49, %v73_v57 }
  0xb4   :  { %v110_v62 = vsel %vm91_vm0, %v90_v59, 0.0 }
  0xb5   :  { %v111_v63 = vadd.f32 %v110_v62, %v109_v55  ;;  %v97_v3 = vsel %vm91_vm0, %v86_v60, 0.0 }
  0xb6   :  { %v98_v7 = vadd.f32 %v97_v3, %v96_v61 }
  0xb7   :  { %v112_v10 = vrot.slane %v111_v63, 4 }
  0xb8   :  { %v99_v11 = vrot.slane %v98_v7, 4 }
  0xb9   :  { %v113_v16 = vadd.f32 %v112_v10, %v111_v63 }
  0xba   :  { %v100_v17 = vadd.f32 %v99_v11, %v98_v7 }
  0xbb   :  { %v114_v22 = vrot.slane %v113_v16, 2 }
  0xbc   :  { %v101_v23 = vrot.slane %v100_v17, 2 }
  0xbd   :  { %v115_v24 = vadd.f32 %v114_v22, %v113_v16 }
  0xbe   :  { %v102_v25 = vadd.f32 %v101_v23, %v100_v17 }
  0xbf   :  { %v116_v26 = vrot.slane %v115_v24, 1 }
  0xc0   :  { %v103_v27 = vrot.slane %v102_v25, 1 }
  0xc1   :  { %v117_v28 = vadd.f32 %v116_v26, %v115_v24 }
  0xc2   :  { %v104_v29 = vadd.f32 %v103_v27, %v102_v25 }
  0xc3   :  { %v119_v30 = vmax.f32 %v117_v28, 0.0 }
  0xc4   :  { %v118_v31 = vmax.f32 %v104_v29, 0.0 }
  0xc5   :  { %124 = vbcast.lane.b32.xlu1 %v119_v30, 256 }
  0xc6   :  { %121 = vbcast.lane.b32.xlu0 %v118_v31, 256 }
 0x137   :  { %v125_v33 = vpop.permute.xlu1 %124 }
 0x138   :  { %v127_v34 = vmul.f32 %v125_v33, %v82_v32  ;;  %v122_v35 = vpop.permute.xlu0 %121 }
 0x139   :  { %v126_v36 = vmul.f32 %v122_v35, %v82_v32 }
 0x13a   :  { %v136_v37 = vsel %vm128_vm1, %v127_v34, 0.0 }
 0x13b   :  { %v137_v38 = vrot.slane %v136_v37, 4  ;;  %v129_v39 = vsel %vm128_vm1, %v126_v36, 0.0 }
 0x13c   :  { %v130_v40 = vrot.slane %v129_v39, 4 }
 0x13d   :  { %v138_v41 = vadd.f32 %v137_v38, %v136_v37 }
 0x13e   :  { %v131_v42 = vadd.f32 %v130_v40, %v129_v39 }
 0x13f   :  { %v139_v43 = vrot.slane %v138_v41, 2 }
 0x140   :  { %v132_v44 = vrot.slane %v131_v42, 2 }
 0x141   :  { %v140_v45 = vadd.f32 %v139_v43, %v138_v41 }
 0x142   :  { %v133_v46 = vadd.f32 %v132_v44, %v131_v42 }
 0x143   :  { %v141_v47 = vrot.slane %v140_v45, 1 }
 0x144   :  { %v134_v48 = vrot.slane %v133_v46, 1 }
 0x145   :  { %v142_v49 = vadd.f32 %v141_v47, %v140_v45 }
 0x146   :  { %v135_v50 = vadd.f32 %v134_v48, %v133_v46 }
 0x147   :  { %v235_v51 = vmul.f32 -1.442695, %v142_v49 }
 0x148   :  { %v234_v52 = vmul.f32 -1.442695, %v135_v50 }
 0x149   :  { %240 = vpow2.f32 %v235_v51 }
 0x14a   :  { %242 = vpow2.f32 %v234_v52 }
 0x153   :  { %v241_v53 = vpop.eup %240 }
 0x154   :  { %v243_v54 = vpop.eup %242  ;;  %v150_v56 = vadd.f32 1.0, %v241_v53 }
 0x155   :  { %v149_v55 = vadd.f32 1.0, %v243_v54 }
 0x157   :  { %244 = vrcp.f32 %v149_v55 }
 0x158   :  { %246 = vrcp.f32 %v150_v56 }
 0x161   :  { %v245_v57 = vpop.eup %244 }
 0x162   :  { %164 = vbcast.lane.b32.xlu0 %v245_v57, 272  ;;  %156 = vbcast.lane.b32.xlu1 %v245_v57, 256  ;;  %v247_v58 = vpop.eup %246 }
 0x166   :  { %171 = vbcast.lane.b32.xlu0 %v247_v58, 256  ;;  %160 = vbcast.lane.b32.xlu1 %v245_v57, 264 }
 0x16a   :  { %179 = vbcast.lane.b32.xlu0 %v247_v58, 272  ;;  %168 = vbcast.lane.b32.xlu1 %v245_v57, 280 }
 0x16e   :  { %175 = vbcast.lane.b32.xlu1 %v247_v58, 264 }
 0x172   :  { %183 = vbcast.lane.b32.xlu1 %v247_v58, 280 }
 0x1d4   :  { %v165_v59 = vpop.permute.xlu0 %164  ;;  %v157_v60 = vpop.permute.xlu1 %156 }
 0x1d5   :  { %v189_v61 = vmul.f32 %v165_v59, %v363_v14  ;;  %v190_v62 = vmul.f32 %v165_v59, %v365_v15  ;;  %v185_v63 = vmul.f32 %v157_v60, %v339_v2  ;;  %v186_v3 = vmul.f32 %v157_v60, %v343_v4 }
 0x1d7   :  { %205 = vst [vmem:[#allocation5 + $0x20] sm:$0xff] %v189_v61  ;;  %206 = vst [vmem:[#allocation5 + $0x28] sm:$0xff] %v190_v62 }
 0x1d8   :  { %201 = vst [vmem:[#allocation5] sm:$0xff] %v185_v63  ;;  %202 = vst [vmem:[#allocation5 + $0x8] sm:$0xff] %v186_v3  ;;  %v172_v7 = vpop.permute.xlu0 %171  ;;  %v161_v10 = vpop.permute.xlu1 %160 }
 0x1d9   :  { %v193_v11 = vmul.f32 %v172_v7, %v335_v0  ;;  %v194_v16 = vmul.f32 %v172_v7, %v337_v1  ;;  %v187_v17 = vmul.f32 %v161_v10, %v351_v8  ;;  %v188_v14 = vmul.f32 %v161_v10, %v353_v9 }
 0x1db   :  { %209 = vst [vmem:[#allocation5 + $0x40] sm:$0xff] %v193_v11  ;;  %210 = vst [vmem:[#allocation5 + $0x48] sm:$0xff] %v194_v16 }
 0x1dc   :  { %203 = vst [vmem:[#allocation5 + $0x10] sm:$0xff] %v187_v17  ;;  %204 = vst [vmem:[#allocation5 + $0x18] sm:$0xff] %v188_v14  ;;  %v180_v2 = vpop.permute.xlu0 %179  ;;  %v169_v4 = vpop.permute.xlu1 %168 }
 0x1dd   :  { %v197_v15 = vmul.f32 %v180_v2, %v359_v12  ;;  %v198_v22 = vmul.f32 %v180_v2, %v361_v13  ;;  %v191_v23 = vmul.f32 %v169_v4, %v375_v20  ;;  %v192_v0 = vmul.f32 %v169_v4, %v377_v21 }
 0x1df   :  { %213 = vst [vmem:[#allocation5 + $0x60] sm:$0xff] %v197_v15  ;;  %214 = vst [vmem:[#allocation5 + $0x68] sm:$0xff] %v198_v22 }
 0x1e0   :  { %207 = vst [vmem:[#allocation5 + $0x30] sm:$0xff] %v191_v23  ;;  %208 = vst [vmem:[#allocation5 + $0x38] sm:$0xff] %v192_v0  ;;  %v176_v1 = vpop.permute.xlu1 %175 }
 0x1e1   :  { %v195_v8 = vmul.f32 %v176_v1, %v345_v5  ;;  %v196_v9 = vmul.f32 %v176_v1, %v347_v6 }
 0x1e3   :  { %211 = vst [vmem:[#allocation5 + $0x50] sm:$0xff] %v195_v8  ;;  %212 = vst [vmem:[#allocation5 + $0x58] sm:$0xff] %v196_v9 }
 0x1e4   :  { %v184_v12 = vpop.permute.xlu1 %183 }
 0x1e5   :  { %v199_v13 = vmul.f32 %v184_v12, %v371_v18  ;;  %v200_v20 = vmul.f32 %v184_v12, %v373_v19 }
 0x1e7   :  { %215 = vst [vmem:[#allocation5 + $0x70] sm:$0xff] %v199_v13  ;;  %216 = vst [vmem:[#allocation5 + $0x78] sm:$0xff] %v200_v20 }
 0x1e8   :  { %281 = shalt.err (!%p278_p12)
}
 0x1e9   :  { %s282_s11 = scalar_lea.hbm %s440_s3, 2048 }
 0x1ea   :  { %p283_p13 = scmp.ne.s32.totalorder %s440_s3, %s282_s11  ;;  %p286_p0 = scmp.lt.u32.totalorder %s282_s11, %s440_s3 }
 0x1ec   :  { %p288_p1 = pnand %p286_p0, %p283_p13 }
 0x1ee   :  { %291 = shalt.err (!%p288_p1)
}
 0x1ef   :  { %228 = dma.vmem_to_hbm [thread:$0]  %s223_s7, 2048, %s440_s3, [#allocation4], %s297_s22, %s297_s22, %s298_s23  }
 0x1f0   :  { %294 = dma.done.wait [#allocation4], 2048  }
 0x1f1   :  { %295 = vsyncadd [#allocation4], 4294965248 }
 0x1f2   :  { %232 = vsyncpa [#allocation3], 1 }
 0x1f3   :  { %233 = vsyncpa [#allocation4], 1 }

</bundles_post_ra>
